<compile_context>
chip_gen: v5e
topology: v5e:2x2
jax: 0.10.0
libtpu: 0.0.40
codegen_flags: <defaults>
</compile_context>

<pallas_src>
import math

import jax
import jax.numpy as jnp
from jax import lax
from jax.experimental import pallas as pl
from jax.experimental.pallas import tpu as pltpu

H = 128  # hidden size, matches 'google/bert_uncased_L-2_H-128_A-2'


# ----------------------------------------------------------------------------
# Generation-aware defaults (VMEM scoped limit, TensorCore count).
# ----------------------------------------------------------------------------
def _tpu_generation_defaults():
    phys = 128 * 1024 * 1024
    try:
        phys = int(getattr(pltpu.get_tpu_info(), "vmem_capacity_bytes", phys))
    except Exception:
        pass
    if phys <= 64 * 1024 * 1024:           # v7x-class: 64 MiB VMEM, 2 TCs / chip
        return 48 * 1024 * 1024, 2
    return 64 * 1024 * 1024, 1             # v5e / v6e: 128 MiB VMEM, 1 TC / chip


VMEM_LIMIT, N_CORES = _tpu_generation_defaults()


# ----------------------------------------------------------------------------
# Single-buffering of grid-invariant resident tables (probed once; fallback OK).
# ----------------------------------------------------------------------------
_SINGLE_BUFFER_OK = None


def _probe_single_buffer():
    def _copy(x_ref, o_ref):
        o_ref[...] = x_ref[...]
    try:
        fn = pl.pallas_call(
            _copy,
            out_shape=jax.ShapeDtypeStruct((8, 128), jnp.float32),
            grid=(1,),
            in_specs=[pl.BlockSpec((8, 128), lambda i: (0, 0),
                                   pipeline_mode=pl.Buffered(1))],
            out_specs=pl.BlockSpec((8, 128), lambda i: (0, 0)),
        )
        jax.block_until_ready(fn(jnp.zeros((8, 128), jnp.float32)))
        return True
    except Exception:
        return False


def _resident_spec(block_shape, index_map):
    """BlockSpec for a grid-invariant resident VMEM table.

    Pallas double-buffers inputs by default even when the block index never changes;
    Buffered(1) halves the resident footprint (matters most on v7x's 64 MiB VMEM).
    Falls back to the default (double-buffered) spec if this Pallas build rejects it.
    """
    global _SINGLE_BUFFER_OK
    if _SINGLE_BUFFER_OK is None:
        _SINGLE_BUFFER_OK = _probe_single_buffer()
    if _SINGLE_BUFFER_OK:
        return pl.BlockSpec(block_shape, index_map, pipeline_mode=pl.Buffered(1))
    return pl.BlockSpec(block_shape, index_map)


# ----------------------------------------------------------------------------
# Kernel 1: dense + tanh for the synthetic encoder  (rows, H) @ (H, H) + b
#   bf16 MXU operands, f32 accumulation, f32 tanh (v5e VPU/EUP have no bf16).
# ----------------------------------------------------------------------------
def _dense_tanh_kernel(x_ref, w_ref, b_ref, o_ref):
    acc = jnp.dot(x_ref[...], w_ref[...], preferred_element_type=jnp.float32)
    o_ref[...] = jnp.tanh(acc + b_ref[...])


def dense_tanh(x, w, b, *, tm_max=1024):
    rows, h = x.shape
    rows8 = 8 * pl.cdiv(max(rows, 1), 8)
    # Generation-aware tiling: a single block on 1-TC chips (v5e/v6e); split across the
    # 2 v7x TensorCores only when each block is at least 128 rows (otherwise the per-step
    # overhead outweighs the megacore split — this kernel is overhead-, not MXU-bound).
    if N_CORES >= 2 and rows8 >= 256:
        tm = 8 * pl.cdiv(pl.cdiv(rows8, 2), 8)
    else:
        tm = rows8
    tm = min(tm, tm_max)
    rows_pad = pl.cdiv(rows, tm) * tm
    x_p = x if rows_pad == rows else jnp.pad(x, ((0, rows_pad - rows), (0, 0)))
    out = pl.pallas_call(
        _dense_tanh_kernel,
        out_shape=jax.ShapeDtypeStruct((rows_pad, h), jnp.float32),
        grid=(rows_pad // tm,),
        in_specs=[pl.BlockSpec((tm, h), lambda i: (i, 0)),
                  pl.BlockSpec((h, h), lambda i: (0, 0)),
                  pl.BlockSpec((1, h), lambda i: (0, 0))],
        out_specs=pl.BlockSpec((tm, h), lambda i: (i, 0)),
        compiler_params=pltpu.CompilerParams(
            dimension_semantics=("parallel",),
            vmem_limit_bytes=VMEM_LIMIT),
    )(x_p.astype(jnp.bfloat16), w.astype(jnp.bfloat16),
      b.reshape(1, h).astype(jnp.float32))
    return out[:rows]


# ----------------------------------------------------------------------------
# Kernel 2: merge_node_representations (masked mean) + F.normalize(p=2, dim=1)
#   Batched over ALL graphs in one launch. nid2rows (flattened, -1 padded) is
#   scalar-prefetched into SMEM; instance embeddings stay resident in VMEM and
#   are gathered per slot with dynamic row loads (no one-hot matrices).
#   The normalize epilogue + output store are block-vectorized over (tn, H).
# ----------------------------------------------------------------------------
def _make_merge_kernel(tn, k_max, h):
    def kernel(nid_smem, embs_ref, out_ref):
        base = pl.program_id(0) * tn

        def node_body(n, carry):
            acc = jnp.zeros((1, h), jnp.float32)
            cnt = 0.0
            for k in range(k_max):                      # k_max is small: fully unrolled
                idx = nid_smem[(base + n) * k_max + k]
                valid = idx >= 0
                wgt = jnp.where(valid, 1.0, 0.0).astype(jnp.float32)
                safe = jnp.where(valid, idx, 0)
                acc = acc + wgt * embs_ref[pl.ds(safe, 1), :]
                cnt = cnt + wgt
            # per-node masked mean (guard empty nodes); normalize happens block-wise below
            out_ref[pl.ds(n, 1), :] = acc / jnp.maximum(cnt, 1.0)
            return carry

        lax.fori_loop(0, tn, node_body, 0, unroll=4)

        # Block-vectorized F.normalize(p=2, dim=1) epilogue + single (tn, h) store.
        mean = out_ref[...]
        nrm_sq = jnp.sum(mean * mean, axis=1, keepdims=True)
        inv = lax.rsqrt(jnp.maximum(nrm_sq, 1e-24))     # EUP rsqrt; F.normalize eps
        out_ref[...] = mean * inv
    return kernel


def merge_and_normalize(instance_embs, nid2rows_all, *, tn_max=128):
    # TODO(synk): at production node counts, switch the whole-array SMEM scalar prefetch of
    # nid_flat to per-tile SMEM blocks, and consider bf16 resident instance embeddings.
    n_nodes, k_max = int(nid2rows_all.shape[0]), int(nid2rows_all.shape[1])
    m, h = instance_embs.shape
    tn = min(tn_max, 8 * pl.cdiv(max(n_nodes, 1), 8))
    n_pad = pl.cdiv(n_nodes, tn) * tn
    nid_pad = jnp.full((n_pad, k_max), -1, jnp.int32)
    nid_pad = nid_pad.at[:n_nodes].set(nid2rows_all.astype(jnp.int32))
    nid_flat = nid_pad.reshape(-1)

    out = pl.pallas_call(
        _make_merge_kernel(tn, k_max, h),
        out_shape=jax.ShapeDtypeStruct((n_pad, h), jnp.float32),
        grid_spec=pltpu.PrefetchScalarGridSpec(
            num_scalar_prefetch=1,
            grid=(n_pad // tn,),
            in_specs=[_resident_spec((m, h), lambda i, nid: (0, 0))],
            out_specs=pl.BlockSpec((tn, h), lambda i, nid: (i, 0))),
        compiler_params=pltpu.CompilerParams(
            dimension_semantics=("parallel",),
            vmem_limit_bytes=VMEM_LIMIT),
    )(nid_flat, instance_embs.astype(jnp.float32))
    return out[:n_nodes]


# ----------------------------------------------------------------------------
# Kernel 3: TransE energy + similarity, batched over all graphs' edges.
#   e   = || emb[src] + w_rel[rel] - emb[dst] ||_1      (distance_p = 1)
#   sim = 1 / (1 + e)                                    (distance_to_similarity)
#   Edge indices (+ total valid-edge count) live in SMEM (scalar prefetch);
#   emb / w_relation stay resident in VMEM (single-buffered when supported);
#   gathers are dynamic row loads; outputs are lane-dense (1, E_pad) slabs.
#   Full tiles run an unroll=8 gather loop; the ragged tail tile bounds the
#   trip count so padded edges do no gather work.
# ----------------------------------------------------------------------------
def _make_transe_kernel(te, e_pad, h):
    def kernel(edges_smem, emb_ref, wrel_ref, e_ref, sim_ref, diff_scratch):
        base = pl.program_id(0) * te
        n_valid = edges_smem[3 * e_pad]                 # total real edges
        nv = jnp.clip(n_valid - base, 0, te)            # valid edges in this tile

        def edge_body(j, carry):
            g = base + j
            src = edges_smem[g]
            rel = edges_smem[e_pad + g]
            dst = edges_smem[2 * e_pad + g]
            s = emb_ref[pl.ds(src, 1), :]
            r = wrel_ref[pl.ds(rel, 1), :]
            d = emb_ref[pl.ds(dst, 1), :]
            diff_scratch[pl.ds(j, 1), :] = s + r - d
            return carry

        @pl.when(nv == te)                              # full tile: unrolled gathers
        def _():
            lax.fori_loop(0, te, edge_body, 0, unroll=8)

        @pl.when(nv < te)                               # ragged tail: skip padded edges
        def _():
            diff_scratch[...] = jnp.zeros_like(diff_scratch)
            lax.fori_loop(0, nv, edge_body, 0)

        absd = jnp.abs(diff_scratch[...])               # (te, H)
        e = jnp.sum(absd, axis=1)                       # (te,)  p=1 norm
        e2 = e[None, :]                                 # lane-dense (1, te)
        e_ref[...] = e2
        sim_ref[...] = 1.0 / (1.0 + e2)                 # exact reciprocal (torch parity)
    return kernel


def transe_energy_and_similarity(emb, w_relation, edges_srd, *, te_max=512):
    # TODO(synk): at production edge counts (~1e5+), switch edges_flat from whole-array
    # SMEM scalar prefetch to per-tile SMEM blocks and consider bf16 node/relation tables.
    n_edges = int(edges_srd.shape[0])
    n_nodes, h = emb.shape
    n_rels = w_relation.shape[0]
    te = min(te_max, 128 * pl.cdiv(max(n_edges, 1), 128))
    e_pad = pl.cdiv(max(n_edges, 1), te) * te
    edges = edges_srd.astype(jnp.int32)

    def pad_col(c):
        return jnp.zeros((e_pad,), jnp.int32).at[:n_edges].set(edges[:, c])

    edges_flat = jnp.concatenate(
        [pad_col(0), pad_col(1), pad_col(2),
         jnp.array([n_edges], jnp.int32)], axis=0)      # trailing valid-edge count

    e_out, sim_out = pl.pallas_call(
        _make_transe_kernel(te, e_pad, h),
        out_shape=(jax.ShapeDtypeStruct((1, e_pad), jnp.float32),
                   jax.ShapeDtypeStruct((1, e_pad), jnp.float32)),
        grid_spec=pltpu.PrefetchScalarGridSpec(
            num_scalar_prefetch=1,
            grid=(e_pad // te,),
            in_specs=[_resident_spec((n_nodes, h), lambda i, ed: (0, 0)),
                      _resident_spec((n_rels, h), lambda i, ed: (0, 0))],
            out_specs=(pl.BlockSpec((1, te), lambda i, ed: (0, i)),
                       pl.BlockSpec((1, te), lambda i, ed: (0, i))),
            scratch_shapes=[pltpu.VMEM((te, h), jnp.float32)]),
        compiler_params=pltpu.CompilerParams(
            dimension_semantics=("parallel",),
            vmem_limit_bytes=VMEM_LIMIT),
    )(edges_flat, emb.astype(jnp.float32), w_relation.astype(jnp.float32))
    return e_out[0, :n_edges], sim_out[0, :n_edges]


# ----------------------------------------------------------------------------
# Parameter init (deterministic, synthetic)
# ----------------------------------------------------------------------------
def init_params(key, vocab, max_seq, h, num_output_rels):
    ks = jax.random.split(key, 5)
    bound = 6.0 / math.sqrt(h)          # nn.init.uniform_ on w_relation
    return {
        'word_emb': 0.02 * jax.random.normal(ks[0], (vocab, h), jnp.float32),
        'pos_emb': 0.02 * jax.random.normal(ks[1], (max_seq, h), jnp.float32),
        'type_emb': 0.02 * jax.random.normal(ks[2], (2, h), jnp.float32),
        'dense_w': 0.05 * jax.random.normal(ks[3], (h, h), jnp.float32),
        'dense_b': jnp.zeros((h,), jnp.float32),
        'w_relation': jax.random.uniform(ks[4], (num_output_rels, h),
                                         jnp.float32, minval=-bound,
                                         maxval=bound),
    }


# ----------------------------------------------------------------------------
# BERTNarrativeGraph.forward (synthetic backbone) + target-token gather.
# The gather is hoisted BEFORE the (pointwise per-token) dense layer.
# ----------------------------------------------------------------------------
def bert_ng_forward(params, input_ids, input_masks, token_type_ids, target_idxs):
    # TODO(synk): pretrained transformers AutoModel backbone replaced by a
    # deterministic synthetic encoder (embedding-sum -> Pallas dense+tanh).
    m, s = input_ids.shape
    x = (params['word_emb'][input_ids]
         + params['pos_emb'][None, :s, :]
         + params['type_emb'][token_type_ids])
    x = x * input_masks[..., None].astype(jnp.float32)
    # torch.gather(outputs[0], 1, target_idxs...) commutes with the per-token
    # dense layer, so gather first and run dense_tanh on (M, H) only.
    x_tgt = jnp.take_along_axis(
        x, target_idxs.astype(jnp.int32)[:, None, None], axis=1)[:, 0, :]
    return dense_tanh(x_tgt, params['dense_w'], params['dense_b'])


# ----------------------------------------------------------------------------
# BertEventTransE.forward (batched: one merge launch, one TransE launch)
# ----------------------------------------------------------------------------
def bert_event_transe_forward(params, bg, input_ids, input_masks, token_type_ids,
                              target_idxs, nid2rows, target_edges=None,
                              mode='embeddings', n_instances=None):
    instance_embs = bert_ng_forward(params, input_ids, input_masks,
                                    token_type_ids, target_idxs)

    # ---- batch merge_node_representations + normalize across ALL graphs ----
    row_offsets = [0]
    for n in n_instances[:-1]:
        row_offsets.append(row_offsets[-1] + int(n))
    k_max = max(int(jnp.asarray(nid).shape[1]) for nid in nid2rows)
    nid_blocks, node_counts = [], []
    for i, nid in enumerate(nid2rows):
        nid = jnp.asarray(nid, jnp.int32)
        if nid.shape[1] < k_max:
            nid = jnp.pad(nid, ((0, 0), (0, k_max - nid.shape[1])),
                          constant_values=-1)
        nid_blocks.append(jnp.where(nid >= 0, nid + row_offsets[i], -1))
        node_counts.append(int(nid.shape[0]))
    nid_all = jnp.concatenate(nid_blocks, axis=0)           # (N_total, k_max)
    node_all = merge_and_normalize(instance_embs, nid_all)  # (N_total, H)

    node_offsets = [0]
    for c in node_counts[:-1]:
        node_offsets.append(node_offsets[-1] + c)
    node_embs = [node_all[node_offsets[i]: node_offsets[i] + node_counts[i]]
                 for i in range(len(nid2rows))]

    n_truncated_gs = len(bg[0])

    if mode == 'loss':
        # TODO(synk): mode='loss' (MarginRankingLoss pairing over n_negs) is host
        # bookkeeping on top of the same TransE kernel; not implemented.
        raise NotImplementedError("mode='loss' not implemented")
    elif mode == 'embeddings':
        return node_embs
    else:
        # predict: batch all graphs' edges into ONE TransE launch, adding each
        # graph's node offset into the concatenated node table.
        edge_blocks, labels = [], []
        for i in range(len(target_edges)):
            for j in range(n_truncated_gs):
                te_ij = jnp.asarray(target_edges[i][j])       # (4, E)
                srd = jnp.stack([te_ij[0].astype(jnp.int32) + node_offsets[i],
                                 te_ij[1].astype(jnp.int32),
                                 te_ij[2].astype(jnp.int32) + node_offsets[i]],
                                axis=1)                        # (E, 3)
                edge_blocks.append(srd)
                labels.append(te_ij[3])
        edges_all = jnp.concatenate(edge_blocks, axis=0)
        y = jnp.concatenate(labels, axis=0)
        _e, y_pred = transe_energy_and_similarity(node_all, params['w_relation'],
                                                  edges_all)
        return y_pred, y


# ----------------------------------------------------------------------------
if __name__ == "__main__":
    key = jax.random.PRNGKey(0)
    S = 16          # sequence length
    VOCAB = 64
    R = 4           # num_output_rels
    n_instances = [6, 6]
    M = sum(n_instances)
    N_NODES = 4
    E = 6           # edges per truncated graph

    k1, k2, k3, k4, kp = jax.random.split(key, 5)
    params = init_params(kp, vocab=VOCAB, max_seq=S, h=H, num_output_rels=R)

    input_ids = jax.random.randint(k1, (M, S), 0, VOCAB, dtype=jnp.int32)
    input_masks = jnp.concatenate(
        [jnp.ones((M, 12), jnp.int32), jnp.zeros((M, S - 12), jnp.int32)], axis=1)
    token_type_ids = jnp.zeros((M, S), jnp.int32)
    target_idxs = jax.random.randint(k2, (M,), 0, 12, dtype=jnp.int32)

    nid_template = jnp.array([[0, 1, -1],
                              [2, -1, -1],
                              [3, 4, -1],
                              [5, -1, -1]], dtype=jnp.int32)
    nid2rows = [nid_template, nid_template]     # per-graph (N_NODES, K)

    bg = [[object()], [object()]]               # one truncated graph per item

    def make_te(k):
        ks, kr, kd = jax.random.split(k, 3)
        src = jax.random.randint(ks, (E,), 0, N_NODES, dtype=jnp.int32)
        rel = jax.random.randint(kr, (E,), 0, R, dtype=jnp.int32)
        dst = jax.random.randint(kd, (E,), 0, N_NODES, dtype=jnp.int32)
        lab = jnp.array([1, 1, 0, 0, 0, 0], dtype=jnp.int32)
        return jnp.stack([src, rel, dst, lab], axis=0)       # (4, E) like torch
    target_edges = [[make_te(k3)], [make_te(k4)]]

    node_embs = bert_event_transe_forward(
        params, bg, input_ids, input_masks, token_type_ids, target_idxs,
        nid2rows, target_edges=target_edges, mode='embeddings',
        n_instances=n_instances)
    y_pred, y = bert_event_transe_forward(
        params, bg, input_ids, input_masks, token_type_ids, target_idxs,
        nid2rows, target_edges=target_edges, mode='predict',
        n_instances=n_instances)

    for ne in node_embs:
        jax.block_until_ready(ne)
    jax.block_until_ready(y_pred)
    jax.block_until_ready(y)
    print("KERNEL_OK")
</pallas_src>

<mosaic_0001>
module attributes {stable_mosaic.version = 11 : i64} {
  func.func @_dense_tanh_kernel(%arg0: i32, %arg1: memref<16x128xbf16, #tpu.memory_space<vmem>>, %arg2: memref<128x128xbf16, #tpu.memory_space<vmem>>, %arg3: memref<1x128xf32, #tpu.memory_space<vmem>>, %arg4: memref<16x128xf32, #tpu.memory_space<vmem>>) attributes {dimension_semantics = [#tpu.dimension_semantics<parallel>], iteration_bounds = array<i64: 1>, scalar_prefetch = 0 : i64, scratch_operands = 0 : i64, tpu.core_type = #tpu.core_type<tc>, window_params = [{transform_indices = @transform_0, window_bounds = array<i64: 16, 128>}, {pipeline_mode = #tpu.pipeline_mode<synchronous>, transform_indices = @transform_1, window_bounds = array<i64: 128, 128>}, {pipeline_mode = #tpu.pipeline_mode<synchronous>, transform_indices = @transform_2, window_bounds = array<i64: 1, 128>}, {transform_indices = @transform_3, window_bounds = array<i64: 16, 128>}]} {
    %c0 = arith.constant 0 : index
    %c0_0 = arith.constant 0 : index
    %0 = vector.load %arg1[%c0, %c0_0] : memref<16x128xbf16, #tpu.memory_space<vmem>>, vector<16x128xbf16>
    %c0_1 = arith.constant 0 : index
    %c0_2 = arith.constant 0 : index
    %1 = vector.load %arg2[%c0_1, %c0_2] : memref<128x128xbf16, #tpu.memory_space<vmem>>, vector<128x128xbf16>
    %cst = arith.constant dense<0.000000e+00> : vector<16x128xf32>
    %2 = tpu.matmul %0, %1, %cst {dimension_numbers = #tpu.dot_dimension_numbers<[1], [0], [0], [1], [0, 0, 1, 1], [], []>} : vector<16x128xbf16>, vector<128x128xbf16>, vector<16x128xf32> -> vector<16x128xf32>
    %c0_3 = arith.constant 0 : index
    %c0_4 = arith.constant 0 : index
    %3 = vector.load %arg3[%c0_3, %c0_4] : memref<1x128xf32, #tpu.memory_space<vmem>>, vector<1x128xf32>
    %4 = vector.broadcast %3 : vector<1x128xf32> to vector<16x128xf32>
    %5 = arith.addf %2, %4 : vector<16x128xf32>
    %6 = math.tanh %5 : vector<16x128xf32>
    %c0_5 = arith.constant 0 : index
    %c0_6 = arith.constant 0 : index
    %7 = vector.load %arg4[%c0_5, %c0_6] : memref<16x128xf32, #tpu.memory_space<vmem>>, vector<16x128xf32>
    tpu.vector_store %arg4[%c0_5, %c0_6], %6 {strides = array<i32>} : memref<16x128xf32, #tpu.memory_space<vmem>>, vector<16x128xf32>,
    return
  }
  func.func @transform_0(%arg0: i32) -> (i32, i32) {
    %c0_i32 = arith.constant 0 : i32
    %c0_i32_0 = arith.constant 0 : i32
    return %arg0, %c0_i32 : i32, i32
  }
  func.func @transform_1(%arg0: i32) -> (i32, i32) {
    %c0_i32 = arith.constant 0 : i32
    %c0_i32_0 = arith.constant 0 : i32
    %c0_i32_1 = arith.constant 0 : i32
    return %c0_i32, %c0_i32_0 : i32, i32
  }
  func.func @transform_2(%arg0: i32) -> (i32, i32) {
    %c0_i32 = arith.constant 0 : i32
    %c0_i32_0 = arith.constant 0 : i32
    %c0_i32_1 = arith.constant 0 : i32
    return %c0_i32, %c0_i32_0 : i32, i32
  }
  func.func @transform_3(%arg0: i32) -> (i32, i32) {
    %c0_i32 = arith.constant 0 : i32
    %c0_i32_0 = arith.constant 0 : i32
    return %arg0, %c0_i32 : i32, i32
  }
}

</mosaic_0001>

<bundles_post_ra>
// kernel: tpu_custom_call.1
= control target key start
LH: loop header
LB: loop body
LE: loop exit
PB: predicated region body
PF: predicated region fallthrough
CT: control target
= control target key end

     0   :  { %8 = vsyncpa [#allocation3], 0  ;;  %s335_s0 = inlined_call_operand.hbm [shape: bf16[16,128], index: 0, kind: input, shape index: {}]   ;;  %s336_s1 = inlined_call_operand.hbm [shape: bf16[128,128], index: 1, kind: input, shape index: {}]   ;;  %s337_s2 = inlined_call_operand.vmem [shape: f32[1,128], index: 2, kind: input, shape index: {}]   ;;  %s338_s3 = inlined_call_operand.hbm [shape: f32[16,128], index: 3, kind: output, shape index: {}]  }
   0x1   :  { %9 = vsyncpa [#allocation6], 0 }
   0x2   :  { %10 = vsyncpa [#allocation4], 0  ;;  %s15_s14 = sshll.u32 %s335_s0, 4  ;;  %s296_s15 = smov [#allocation2]   ;;  %s16_s14 = int_to_ptr.hbm [resolvable:$true] %s15_s14 }
   0x3   :  { %s17_s16 = sshll.u32 %s296_s15, 4  ;;  %s28_s19 = sshll.u32 %s336_s1, 4  ;;  %s18_s16 = int_to_ptr.vmem [resolvable:$true] %s17_s16  ;;  %s29_s19 = int_to_ptr.hbm [resolvable:$true] %s28_s19 }
   0x4   :  { %s297_s20 = smov 64   ;;  %s298_s21 = smov 4  }
   0x5   :  { %23 = dma.hbm_to_vmem [thread:$0]  %s16_s14, 128, %s18_s16, [#allocation3], %s297_s20, %s297_s20, %s298_s21  }
   0x6   :  { %s299_s22 = smov [#allocation5]  }
   0x7   :  { %s30_s23 = sshll.u32 %s299_s22, 4  ;;  %s31_s23 = int_to_ptr.vmem [resolvable:$true] %s30_s23 }
   0x8   :  { %36 = dma.hbm_to_vmem [thread:$0]  %s29_s19, 1024, %s31_s23, [#allocation6], %s297_s20, %s297_s20, %s298_s21  }
   0x9   :  { %290 = dma.done.wait [#allocation3], 128  }
   0xa   :  { %291 = vsyncadd [#allocation3], 4294967168 }
   0xb   :  { %292 = dma.done.wait [#allocation6], 1024  }
   0xc   :  { %293 = vsyncadd [#allocation6], 4294966272  ;;  %v205_v0 = vld [vmem:[#allocation5 + $0x38] sm:$0xff]  ;;  %v204_v1 = vld [vmem:[#allocation5 + $0x30] sm:$0xff]  ;;  %s300_s24 = smov [#allocation7]   ;;  %s147_s28 = sshll.u32 %s338_s3, 4  ;;  %s148_s28 = int_to_ptr.hbm [resolvable:$true] %s147_s28 }
   0xd   :  { %123 = vmatpush.bf16.msra.mxu0 %v205_v0  ;;  %v203_v2 = vld [vmem:[#allocation5 + $0x28] sm:$0xff]  ;;  %v202_v3 = vld [vmem:[#allocation5 + $0x20] sm:$0xff]  ;;  %v201_v4 = vld [vmem:[#allocation5 + $0x18] sm:$0xff]  ;;  %s145_s25 = sshll.u32 %s300_s24, 4  ;;  %s301_s29 = smov 128   ;;  %s146_s25 = int_to_ptr.vmem [resolvable:$true] %s145_s25 }
   0xe   :  { %v200_v5 = vld [vmem:[#allocation5 + $0x10] sm:$0xff]  ;;  %v199_v6 = vld [vmem:[#allocation5 + $0x8] sm:$0xff]  ;;  %v198_v7 = vld [vmem:[#allocation5] sm:$0xff] }
   0xf   :  { %v197_v8 = vld [vmem:[#allocation2] sm:$0xff] }
  0x10   :  { %v213_v9 = vld [vmem:[%s337_s2] ss:$0 sm:$0xff]  ;;  %s302_s2 = smov 8  }
  0x11   :  { %124 = vmatpush.bf16.msra.mxu0 %v204_v1 }
  0x15   :  { %125 = vmatpush.bf16.msra.mxu0 %v203_v2 }
  0x19   :  { %126 = vmatpush.bf16.msra.mxu0 %v202_v3 }
  0x1d   :  { %127 = vmatpush.bf16.msra.mxu0 %v201_v4 }
  0x21   :  { %128 = vmatpush.bf16.msra.mxu0 %v200_v5 }
  0x25   :  { %129 = vmatpush.bf16.msra.mxu0 %v199_v6 }
  0x29   :  { %130 = vmatpush.bf16.msra.mxu0 %v198_v7 }
  0x2c   :  { %131 = vmatmul.bf16.vlgmr.msra.gmra.mxu0 %v197_v8 }
  0xa9   :  { %v132_v10 = vpop.f32.mrf.mxu0 }
  0xaa   :  { %v133_v11 = vadd.f32 %v213_v9, %v132_v10 }
  0xac   :  { %214 = vtanh.f32 %v133_v11 }
  0xb1   :  { %v134_v12 = vpop.f32.mrf.mxu0 }
  0xb2   :  { %v215_v13 = vpop.eup %214  ;;  %v135_v14 = vadd.f32 %v213_v9, %v134_v12 }
  0xb3   :  { %139 = vst [vmem:[#allocation7] sm:$0xff] %v215_v13 }
  0xb4   :  { %216 = vtanh.f32 %v135_v14 }
  0xba   :  { %v217_v15 = vpop.eup %216 }
  0xbb   :  { %140 = vst [vmem:[#allocation7 + $0x8] sm:$0xff] %v217_v15 }
  0xbc   :  { %153 = dma.vmem_to_hbm [thread:$0]  %s146_s25, 256, %s148_s28, [#allocation4], %s301_s29, %s301_s29, %s302_s2  }
  0xbd   :  { %294 = dma.done.wait [#allocation4], 256  }
  0xbe   :  { %295 = vsyncadd [#allocation4], 4294967040 }
  0xbf   :  { %158 = vsyncpa [#allocation3], 1 }
  0xc0   :  { %159 = vsyncpa [#allocation6], 1 }
  0xc1   :  { %160 = vsyncpa [#allocation4], 1 }

</bundles_post_ra>
